<compile_context>
chip_gen: v7x
topology: tpu7x:2x2x1
jax: 0.10.0
libtpu: 0.0.40
codegen_flags: <defaults>
</compile_context>

<pallas_src>
import functools

import jax
import jax.numpy as jnp
import numpy as np
from jax import lax
from jax.experimental import pallas as pl
from jax.experimental.pallas import tpu as pltpu

EPS = 1e-5          # torch BatchNorm1d default eps
NEG_SLOPE = 0.01    # torch LeakyReLU default negative_slope


# --------------------------------------------------------------------------
# small helpers
# --------------------------------------------------------------------------
def _round_up(x, m):
    return (x + m - 1) // m * m


def _fold_bn(gamma, beta, mean, var):
    scale = gamma / jnp.sqrt(var + EPS)
    return scale, beta - mean * scale


def _num_tensorcores():
    """Best-effort TensorCores-per-chip query (v7x has 2, v5e/v6e have 1)."""
    try:
        info = pltpu.get_tpu_info()
        for attr in ("num_tensorcores", "tensorcores_per_chip",
                     "num_cores", "core_count"):
            v = getattr(info, attr, None)
            if isinstance(v, int) and v > 0:
                return v
    except Exception:
        pass
    try:
        if "v7" in jax.devices()[0].device_kind.lower():
            return 2
    except Exception:
        pass
    return 1


def _static_roll(x, shift):
    """jnp.roll(x, shift, axis=-1) with a static shift (lane rotation)."""
    n = x.shape[-1]
    shift = int(shift) % n
    if shift == 0:
        return x
    ax = x.ndim - 1
    hi = lax.slice_in_dim(x, n - shift, n, axis=ax)
    lo = lax.slice_in_dim(x, 0, n - shift, axis=ax)
    return lax.concatenate([hi, lo], dimension=ax)


# --------------------------------------------------------------------------
# Pallas kernel: rolled pair-products -> (folded) 3-layer MLP
# --------------------------------------------------------------------------
def modstack_kernel(xu_ref, xi_ref, w1e_ref, b1_ref, w2_ref, b2_ref,
                    w3r_ref, b3_ref, o_ref, *, shifts):
    # Elementwise math in f32 (v5e has no bf16 VPU); activations may arrive bf16.
    xu = xu_ref[...].astype(jnp.float32)                    # [TB, LANES]
    xi = xi_ref[...].astype(jnp.float32)                    # [TB, LANES]

    # layer 1: pair products + lys_bn + Linear1 + bn1, all folded into W1e/B1f.
    #   h = sum_s (xu * roll(xi, s)) @ W1e[s] + B1f
    # Each static roll aligns xi mode-slab b with xu mode-slab a for the pairs
    # with (a - b) * D == s (mod LANES); the per-pair sum over D is done by the
    # MXU (W1e rows for unused / padded lanes are zero).
    acc = None
    for s_idx, s in enumerate(shifts):
        xi_s = xi if s == 0 else _static_roll(xi, s)
        part = jnp.dot(xu * xi_s, w1e_ref[s_idx],
                       preferred_element_type=jnp.float32)
        acc = part if acc is None else acc + part
    h = acc + b1_ref[...]
    h = jnp.where(h >= 0.0, h, NEG_SLOPE * h)               # LeakyReLU

    # layer 2 (Linear2 + bn2 folded)
    h = jnp.dot(h, w2_ref[...], preferred_element_type=jnp.float32) + b2_ref[...]
    h = jnp.where(h >= 0.0, h, NEG_SLOPE * h)

    # final projection, transposed so the output row is lane-dense: [1, TB]
    out = lax.dot_general(w3r_ref[...], h,
                          dimension_numbers=(((1,), (1,)), ((), ())),
                          preferred_element_type=jnp.float32)
    o_ref[...] = (out + b3_ref[...]).astype(o_ref.dtype)


# --------------------------------------------------------------------------
# One-time preparation: fold BNs, pre-normalize the embedding table, build
# the roll-expanded layer-1 weights.  Reused across forward calls.
# --------------------------------------------------------------------------
def prepare_modstack(X, params, lys, act_dtype=jnp.bfloat16):
    N, M, D = X.shape
    assert M == 3, "ModStack assumes 3 modes"
    assert all(0 <= a < 3 and 0 <= b < 3 for (a, b) in lys)
    L = len(lys)
    H = params["w1"].shape[1]
    LANES = _round_up(3 * D, 128)            # lane-dense, vreg-aligned layout

    # fold u_bn / i_bn into the embedding table once (O(N), not O(B) per call)
    u_s, u_b = _fold_bn(params["u_gamma"], params["u_beta"],
                        params["u_mean"], params["u_var"])          # [3, D]
    i_s, i_b = _fold_bn(params["i_gamma"], params["i_beta"],
                        params["i_mean"], params["i_var"])          # [3, D]
    Xu = (X.astype(jnp.float32) * u_s[None] + u_b[None]).reshape(N, 3 * D)
    Xi = (X.astype(jnp.float32) * i_s[None] + i_b[None]).reshape(N, 3 * D)
    if LANES > 3 * D:
        pad = ((0, 0), (0, LANES - 3 * D))
        Xu = jnp.pad(Xu, pad)
        Xi = jnp.pad(Xi, pad)
    Xu = Xu.astype(act_dtype)                # bf16 on the wire by default
    Xi = Xi.astype(act_dtype)

    # fold lys_bn + Linear1 + bn1, and Linear2 + bn2
    ly_s, ly_b = _fold_bn(params["ly_gamma"], params["ly_beta"],
                          params["ly_mean"], params["ly_var"])      # [L]
    g1, s1 = _fold_bn(params["bn1_gamma"], params["bn1_beta"],
                      params["bn1_mean"], params["bn1_var"])        # [H]
    g2, s2 = _fold_bn(params["bn2_gamma"], params["bn2_beta"],
                      params["bn2_mean"], params["bn2_var"])        # [H]
    w1, b1 = params["w1"], params["b1"].reshape(-1)                 # [L,H],[H]
    w2, b2 = params["w2"], params["b2"].reshape(-1)                 # [H,H],[H]

    W1f = (ly_s[:, None] * w1) * g1[None, :]                        # [L, H]
    B1f = ((ly_b @ w1) * g1 + b1 * g1 + s1).reshape(1, H)           # [1, H]
    W2f = w2 * g2[None, :]                                          # [H, H]
    B2f = (b2 * g2 + s2).reshape(1, H)                              # [1, H]

    # Expand W1f over the rolled-lane layout: pair (a, b) contributes W1f[l]
    # at xu lane-slab a for the roll shift s = (a - b) * D  (mod LANES).
    def shift_of(a, b):
        return ((a - b) * D) % LANES

    shifts = tuple(sorted({shift_of(a, b) for (a, b) in lys}))
    W1e = jnp.zeros((len(shifts), LANES, H), jnp.float32)
    for l, (a, b) in enumerate(lys):
        s_idx = shifts.index(shift_of(a, b))
        W1e = W1e.at[s_idx, a * D:(a + 1) * D, :].add(
            jnp.broadcast_to(W1f[l], (D, H)))

    return {
        "Xu": Xu, "Xi": Xi,
        "W1e": W1e, "B1f": B1f, "W2f": W2f, "B2f": B2f,
        "w3r": params["w3"].reshape(1, H), "b3": params["b3"].reshape(1, 1),
        "shifts": shifts, "lanes": LANES, "H": H,
    }


# --------------------------------------------------------------------------
# Forward: gather (XLA glue), tile selection, pallas_call
# --------------------------------------------------------------------------
def modstack_forward(ids, prep, *, tb=1024):
    B = ids.shape[0]
    LANES, H = prep["lanes"], prep["H"]
    shifts = prep["shifts"]
    S = len(shifts)

    # data-dependent gather of pre-normalized rows (glue, outside the kernel)
    xu = prep["Xu"][ids[:, 0]]                                      # [B, LANES]
    xi = prep["Xi"][ids[:, 1]]                                      # [B, LANES]

    # ---- tile selection --------------------------------------------------
    row_align = 16 if jnp.dtype(xu.dtype).itemsize < 4 else 8
    tb_req = max(row_align, min(int(tb), _round_up(B, row_align)))
    n_steps = -(-B // tb_req)
    # Only force a 2-way split when the chip has 2 TensorCores (v7x) AND the
    # halves are big enough to amortize the ~0.35us per-grid-step overhead.
    if n_steps == 1 and B >= 256 and _num_tensorcores() >= 2:
        n_steps = 2
    tb_eff = _round_up(-(-B // n_steps), row_align)
    B_pad = tb_eff * n_steps
    if B_pad != B:
        pad = ((0, B_pad - B), (0, 0))
        xu = jnp.pad(xu, pad)
        xi = jnp.pad(xi, pad)

    batch_spec = pl.BlockSpec((tb_eff, LANES), lambda i: (i, 0))

    def bcast(shape):
        zeros = (0,) * len(shape)
        return pl.BlockSpec(shape, lambda i: zeros)

    kernel = functools.partial(modstack_kernel, shifts=shifts)
    out2d = pl.pallas_call(
        kernel,
        out_shape=jax.ShapeDtypeStruct((n_steps, tb_eff), jnp.float32),
        grid=(n_steps,),
        in_specs=[
            batch_spec, batch_spec,
            bcast((S, LANES, H)), bcast((1, H)),
            bcast((H, H)), bcast((1, H)),
            bcast((1, H)), bcast((1, 1)),
        ],
        out_specs=pl.BlockSpec((1, tb_eff), lambda i: (i, 0)),
        compiler_params=pltpu.CompilerParams(
            dimension_semantics=("parallel",)),
    )(xu, xi, prep["W1e"], prep["B1f"], prep["W2f"], prep["B2f"],
      prep["w3r"], prep["b3"])

    return out2d.reshape(-1)[:B].reshape(B, 1)


# --------------------------------------------------------------------------
# Pure-JAX reference (mirrors the PyTorch forward, inference mode).
# `act_dtype` models the kernel's activation wire precision: the post-BN
# activations are rounded to act_dtype at exactly the point where the kernel
# path quantizes them (bf16 over HBM), then everything continues in f32.
# With act_dtype=float32 this is the literal torch-semantics reference.
# --------------------------------------------------------------------------
def modstack_reference(X, ids, params, lys, act_dtype=jnp.float32):
    def bn(x, gamma, beta, mean, var):
        scale = gamma / jnp.sqrt(var + EPS)
        return x * scale + (beta - mean * scale)

    xu_raw = X[ids[:, 0]].astype(jnp.float32)
    xi_raw = X[ids[:, 1]].astype(jnp.float32)
    xu = [bn(xu_raw[:, k, :], params["u_gamma"][k], params["u_beta"][k],
             params["u_mean"][k], params["u_var"][k]) for k in range(3)]
    xi = [bn(xi_raw[:, k, :], params["i_gamma"][k], params["i_beta"][k],
             params["i_mean"][k], params["i_var"][k]) for k in range(3)]
    if act_dtype != jnp.float32:
        xu = [x.astype(act_dtype).astype(jnp.float32) for x in xu]
        xi = [x.astype(act_dtype).astype(jnp.float32) for x in xi]
    p = jnp.concatenate(
        [jnp.sum(xu[a] * xi[b], axis=1, keepdims=True) for (a, b) in lys],
        axis=-1)
    pred = bn(p, params["ly_gamma"], params["ly_beta"],
              params["ly_mean"], params["ly_var"])
    h = pred @ params["w1"] + params["b1"]
    h = bn(h, params["bn1_gamma"], params["bn1_beta"],
           params["bn1_mean"], params["bn1_var"])
    h = jnp.where(h >= 0.0, h, NEG_SLOPE * h)
    h = h @ params["w2"] + params["b2"]
    h = bn(h, params["bn2_gamma"], params["bn2_beta"],
           params["bn2_mean"], params["bn2_var"])
    h = jnp.where(h >= 0.0, h, NEG_SLOPE * h)
    return h @ params["w3"] + params["b3"]


# --------------------------------------------------------------------------
# Deterministic parameter init (shapes follow ModStack.__init__ defaults:
# mlp_size=64, mlp_layer=3, if_xavier=True).  Linear weights stored as
# [in_features, out_features] (transpose of torch's [out, in]).
# --------------------------------------------------------------------------
def init_params(key, D, L, H):
    keys = iter(jax.random.split(key, 32))

    def bn_params(shape):
        gamma = jax.random.uniform(next(keys), shape, jnp.float32, 0.5, 1.5)
        beta = 0.1 * jax.random.normal(next(keys), shape, jnp.float32)
        mean = 0.1 * jax.random.normal(next(keys), shape, jnp.float32)
        var = jax.random.uniform(next(keys), shape, jnp.float32, 0.5, 1.5)
        return gamma, beta, mean, var

    def xavier(shape):
        fan_in, fan_out = shape
        bound = (6.0 / (fan_in + fan_out)) ** 0.5
        return jax.random.uniform(next(keys), shape, jnp.float32, -bound, bound)

    p = {}
    (p["u_gamma"], p["u_beta"], p["u_mean"], p["u_var"]) = bn_params((3, D))
    (p["i_gamma"], p["i_beta"], p["i_mean"], p["i_var"]) = bn_params((3, D))
    (p["ly_gamma"], p["ly_beta"], p["ly_mean"], p["ly_var"]) = bn_params((L,))
    p["w1"] = xavier((L, H))
    p["b1"] = 0.1 * jax.random.normal(next(keys), (1, H), jnp.float32)
    (p["bn1_gamma"], p["bn1_beta"], p["bn1_mean"], p["bn1_var"]) = bn_params((H,))
    p["w2"] = xavier((H, H))
    p["b2"] = 0.1 * jax.random.normal(next(keys), (1, H), jnp.float32)
    (p["bn2_gamma"], p["bn2_beta"], p["bn2_mean"], p["bn2_var"]) = bn_params((H,))
    p["w3"] = xavier((H, 1))
    p["b3"] = 0.1 * jax.random.normal(next(keys), (1, 1), jnp.float32)
    return p


if __name__ == "__main__":
    N, D = 20, 32        # embs: [N, 3, D]
    B = 16               # batch of (user, item) id pairs
    H = 64               # mlp_size default
    lys = [(i, j) for i in range(3) for j in range(3)]   # layer_pairs, L = 9
    L = len(lys)

    key = jax.random.PRNGKey(0)
    k_x, k_ids, k_p = jax.random.split(key, 3)
    X = jax.random.normal(k_x, (N, 3, D), jnp.float32)
    ids = jax.random.randint(k_ids, (B, 2), 0, N, jnp.int32)
    params = init_params(k_p, D, L, H)

    # one-time prep (folded weights + pre-normalized bf16 tables), then forward
    prep = prepare_modstack(X, params, lys, act_dtype=jnp.bfloat16)
    out = modstack_forward(ids, prep)          # toy case: grid=(1,), tb_eff=16
    out = jax.block_until_ready(out)

    # reference with matching activation wire precision (bf16); everything
    # downstream (and the kernel's matmuls) stays f32, so agreement is tight.
    ref = modstack_reference(X, ids, params, lys, act_dtype=jnp.bfloat16)
    ref = jax.block_until_ready(ref)

    assert out.shape == (B, 1), out.shape
    np.testing.assert_allclose(np.asarray(out), np.asarray(ref),
                               rtol=2e-3, atol=2e-3)
    print("KERNEL_OK")
</pallas_src>

<mosaic_0001>
module attributes {stable_mosaic.version = 11 : i64} {
  func.func @modstack_kernel(%arg0: i32, %arg1: memref<16x128xbf16, #tpu.memory_space<vmem>>, %arg2: memref<16x128xbf16, #tpu.memory_space<vmem>>, %arg3: memref<4x128x64xf32, #tpu.memory_space<vmem>>, %arg4: memref<1x64xf32, #tpu.memory_space<vmem>>, %arg5: memref<64x64xf32, #tpu.memory_space<vmem>>, %arg6: memref<1x64xf32, #tpu.memory_space<vmem>>, %arg7: memref<1x64xf32, #tpu.memory_space<vmem>>, %arg8: memref<1x1xf32, #tpu.memory_space<vmem>>, %arg9: memref<1x16xf32, #tpu.memory_space<vmem>>) attributes {dimension_semantics = [#tpu.dimension_semantics<parallel>], iteration_bounds = array<i64: 1>, scalar_prefetch = 0 : i64, scratch_operands = 0 : i64, tpu.core_type = #tpu.core_type<tc>, window_params = [{transform_indices = @transform_0, window_bounds = array<i64: 16, 128>}, {transform_indices = @transform_1, window_bounds = array<i64: 16, 128>}, {pipeline_mode = #tpu.pipeline_mode<synchronous>, transform_indices = @transform_2, window_bounds = array<i64: 4, 128, 64>}, {pipeline_mode = #tpu.pipeline_mode<synchronous>, transform_indices = @transform_3, window_bounds = array<i64: 1, 64>}, {pipeline_mode = #tpu.pipeline_mode<synchronous>, transform_indices = @transform_4, window_bounds = array<i64: 64, 64>}, {pipeline_mode = #tpu.pipeline_mode<synchronous>, transform_indices = @transform_5, window_bounds = array<i64: 1, 64>}, {pipeline_mode = #tpu.pipeline_mode<synchronous>, transform_indices = @transform_6, window_bounds = array<i64: 1, 64>}, {pipeline_mode = #tpu.pipeline_mode<synchronous>, transform_indices = @transform_7, window_bounds = array<i64: 1, 1>}, {transform_indices = @transform_8, window_bounds = array<i64: 1, 16>}]} {
    %c0 = arith.constant 0 : index
    %c0_0 = arith.constant 0 : index
    %0 = vector.load %arg1[%c0, %c0_0] : memref<16x128xbf16, #tpu.memory_space<vmem>>, vector<16x128xbf16>
    %1 = arith.extf %0 : vector<16x128xbf16> to vector<16x128xf32>
    %c0_1 = arith.constant 0 : index
    %c0_2 = arith.constant 0 : index
    %2 = vector.load %arg2[%c0_1, %c0_2] : memref<16x128xbf16, #tpu.memory_space<vmem>>, vector<16x128xbf16>
    %3 = arith.extf %2 : vector<16x128xbf16> to vector<16x128xf32>
    %4 = arith.mulf %1, %3 : vector<16x128xf32>
    %c0_3 = arith.constant 0 : index
    %c0_4 = arith.constant 0 : index
    %c0_5 = arith.constant 0 : index
    %5 = vector.load %arg3[%c0_3, %c0_4, %c0_5] : memref<4x128x64xf32, #tpu.memory_space<vmem>>, vector<1x128x64xf32>
    %6 = vector.shape_cast %5 : vector<1x128x64xf32> to vector<128x64xf32>
    %cst = arith.constant dense<0.000000e+00> : vector<16x64xf32>
    %7 = tpu.matmul %4, %6, %cst {dimension_numbers = #tpu.dot_dimension_numbers<[1], [0], [0], [1], [0, 0, 1, 1], [], []>} : vector<16x128xf32>, vector<128x64xf32>, vector<16x64xf32> -> vector<16x64xf32>
    %8 = vector.extract_strided_slice %3 {offsets = [0, 96], sizes = [16, 32], strides = [1, 1]} : vector<16x128xf32> to vector<16x32xf32>
    %9 = vector.extract_strided_slice %3 {offsets = [0, 0], sizes = [16, 96], strides = [1, 1]} : vector<16x128xf32> to vector<16x96xf32>
    %10 = tpu.concatenate %8, %9 in 1 : vector<16x32xf32>, vector<16x96xf32> -> vector<16x128xf32>
    %11 = arith.mulf %1, %10 : vector<16x128xf32>
    %c1 = arith.constant 1 : index
    %c0_6 = arith.constant 0 : index
    %c0_7 = arith.constant 0 : index
    %12 = vector.load %arg3[%c1, %c0_6, %c0_7] : memref<4x128x64xf32, #tpu.memory_space<vmem>>, vector<1x128x64xf32>
    %13 = vector.shape_cast %12 : vector<1x128x64xf32> to vector<128x64xf32>
    %cst_8 = arith.constant dense<0.000000e+00> : vector<16x64xf32>
    %14 = tpu.matmul %11, %13, %cst_8 {dimension_numbers = #tpu.dot_dimension_numbers<[1], [0], [0], [1], [0, 0, 1, 1], [], []>} : vector<16x128xf32>, vector<128x64xf32>, vector<16x64xf32> -> vector<16x64xf32>
    %15 = arith.addf %7, %14 : vector<16x64xf32>
    %16 = vector.extract_strided_slice %3 {offsets = [0, 64], sizes = [16, 64], strides = [1, 1]} : vector<16x128xf32> to vector<16x64xf32>
    %17 = vector.extract_strided_slice %3 {offsets = [0, 0], sizes = [16, 64], strides = [1, 1]} : vector<16x128xf32> to vector<16x64xf32>
    %18 = tpu.concatenate %16, %17 in 1 : vector<16x64xf32>, vector<16x64xf32> -> vector<16x128xf32>
    %19 = arith.mulf %1, %18 : vector<16x128xf32>
    %c2 = arith.constant 2 : index
    %c0_9 = arith.constant 0 : index
    %c0_10 = arith.constant 0 : index
    %20 = vector.load %arg3[%c2, %c0_9, %c0_10] : memref<4x128x64xf32, #tpu.memory_space<vmem>>, vector<1x128x64xf32>
    %21 = vector.shape_cast %20 : vector<1x128x64xf32> to vector<128x64xf32>
    %cst_11 = arith.constant dense<0.000000e+00> : vector<16x64xf32>
    %22 = tpu.matmul %19, %21, %cst_11 {dimension_numbers = #tpu.dot_dimension_numbers<[1], [0], [0], [1], [0, 0, 1, 1], [], []>} : vector<16x128xf32>, vector<128x64xf32>, vector<16x64xf32> -> vector<16x64xf32>
    %23 = arith.addf %15, %22 : vector<16x64xf32>
    %24 = vector.extract_strided_slice %3 {offsets = [0, 32], sizes = [16, 96], strides = [1, 1]} : vector<16x128xf32> to vector<16x96xf32>
    %25 = vector.extract_strided_slice %3 {offsets = [0, 0], sizes = [16, 32], strides = [1, 1]} : vector<16x128xf32> to vector<16x32xf32>
    %26 = tpu.concatenate %24, %25 in 1 : vector<16x96xf32>, vector<16x32xf32> -> vector<16x128xf32>
    %27 = arith.mulf %1, %26 : vector<16x128xf32>
    %c3 = arith.constant 3 : index
    %c0_12 = arith.constant 0 : index
    %c0_13 = arith.constant 0 : index
    %28 = vector.load %arg3[%c3, %c0_12, %c0_13] : memref<4x128x64xf32, #tpu.memory_space<vmem>>, vector<1x128x64xf32>
    %29 = vector.shape_cast %28 : vector<1x128x64xf32> to vector<128x64xf32>
    %cst_14 = arith.constant dense<0.000000e+00> : vector<16x64xf32>
    %30 = tpu.matmul %27, %29, %cst_14 {dimension_numbers = #tpu.dot_dimension_numbers<[1], [0], [0], [1], [0, 0, 1, 1], [], []>} : vector<16x128xf32>, vector<128x64xf32>, vector<16x64xf32> -> vector<16x64xf32>
    %31 = arith.addf %23, %30 : vector<16x64xf32>
    %c0_15 = arith.constant 0 : index
    %c0_16 = arith.constant 0 : index
    %32 = vector.load %arg4[%c0_15, %c0_16] : memref<1x64xf32, #tpu.memory_space<vmem>>, vector<1x64xf32>
    %33 = vector.broadcast %32 : vector<1x64xf32> to vector<16x64xf32>
    %34 = arith.addf %31, %33 : vector<16x64xf32>
    %cst_17 = arith.constant 0.000000e+00 : f32
    %35 = vector.broadcast %cst_17 : f32 to vector<16x64xf32>
    %36 = arith.cmpf oge, %34, %35 : vector<16x64xf32>
    %cst_18 = arith.constant 0.00999999977 : f32
    %37 = vector.broadcast %cst_18 : f32 to vector<16x64xf32>
    %38 = arith.mulf %37, %34 : vector<16x64xf32>
    %39 = arith.select %36, %34, %38 : vector<16x64xi1>, vector<16x64xf32>
    %c0_19 = arith.constant 0 : index
    %c0_20 = arith.constant 0 : index
    %40 = vector.load %arg5[%c0_19, %c0_20] : memref<64x64xf32, #tpu.memory_space<vmem>>, vector<64x64xf32>
    %cst_21 = arith.constant dense<0.000000e+00> : vector<16x64xf32>
    %41 = tpu.matmul %39, %40, %cst_21 {dimension_numbers = #tpu.dot_dimension_numbers<[1], [0], [0], [1], [0, 0, 1, 1], [], []>} : vector<16x64xf32>, vector<64x64xf32>, vector<16x64xf32> -> vector<16x64xf32>
    %c0_22 = arith.constant 0 : index
    %c0_23 = arith.constant 0 : index
    %42 = vector.load %arg6[%c0_22, %c0_23] : memref<1x64xf32, #tpu.memory_space<vmem>>, vector<1x64xf32>
    %43 = vector.broadcast %42 : vector<1x64xf32> to vector<16x64xf32>
    %44 = arith.addf %41, %43 : vector<16x64xf32>
    %cst_24 = arith.constant 0.000000e+00 : f32
    %45 = vector.broadcast %cst_24 : f32 to vector<16x64xf32>
    %46 = arith.cmpf oge, %44, %45 : vector<16x64xf32>
    %cst_25 = arith.constant 0.00999999977 : f32
    %47 = vector.broadcast %cst_25 : f32 to vector<16x64xf32>
    %48 = arith.mulf %47, %44 : vector<16x64xf32>
    %49 = arith.select %46, %44, %48 : vector<16x64xi1>, vector<16x64xf32>
    %c0_26 = arith.constant 0 : index
    %c0_27 = arith.constant 0 : index
    %50 = vector.load %arg7[%c0_26, %c0_27] : memref<1x64xf32, #tpu.memory_space<vmem>>, vector<1x64xf32>
    %cst_28 = arith.constant dense<0.000000e+00> : vector<1x16xf32>
    %51 = tpu.matmul %50, %49, %cst_28 {dimension_numbers = #tpu.dot_dimension_numbers<[1], [1], [0], [0], [0, 0, 1, 0], [], []>} : vector<1x64xf32>, vector<16x64xf32>, vector<1x16xf32> -> vector<1x16xf32>
    %c0_29 = arith.constant 0 : index
    %c0_30 = arith.constant 0 : index
    %52 = vector.load %arg8[%c0_29, %c0_30] : memref<1x1xf32, #tpu.memory_space<vmem>>, vector<1x1xf32>
    %53 = vector.broadcast %52 : vector<1x1xf32> to vector<1x16xf32>
    %54 = arith.addf %51, %53 : vector<1x16xf32>
    %c0_31 = arith.constant 0 : index
    %c0_32 = arith.constant 0 : index
    %55 = vector.load %arg9[%c0_31, %c0_32] : memref<1x16xf32, #tpu.memory_space<vmem>>, vector<1x16xf32>
    tpu.vector_store %arg9[%c0_31, %c0_32], %54 {strides = array<i32>} : memref<1x16xf32, #tpu.memory_space<vmem>>, vector<1x16xf32>,
    return
  }
  func.func @transform_0(%arg0: i32) -> (i32, i32) {
    %c0_i32 = arith.constant 0 : i32
    %c0_i32_0 = arith.constant 0 : i32
    return %arg0, %c0_i32 : i32, i32
  }
  func.func @transform_1(%arg0: i32) -> (i32, i32) {
    %c0_i32 = arith.constant 0 : i32
    %c0_i32_0 = arith.constant 0 : i32
    return %arg0, %c0_i32 : i32, i32
  }
  func.func @transform_2(%arg0: i32) -> (i32, i32, i32) {
    %c0_i32 = arith.constant 0 : i32
    %c0_i32_0 = arith.constant 0 : i32
    %c0_i32_1 = arith.constant 0 : i32
    %c0_i32_2 = arith.constant 0 : i32
    return %c0_i32, %c0_i32_0, %c0_i32_1 : i32, i32, i32
  }
  func.func @transform_3(%arg0: i32) -> (i32, i32) {
    %c0_i32 = arith.constant 0 : i32
    %c0_i32_0 = arith.constant 0 : i32
    %c0_i32_1 = arith.constant 0 : i32
    return %c0_i32, %c0_i32_0 : i32, i32
  }
  func.func @transform_4(%arg0: i32) -> (i32, i32) {
    %c0_i32 = arith.constant 0 : i32
    %c0_i32_0 = arith.constant 0 : i32
    %c0_i32_1 = arith.constant 0 : i32
    return %c0_i32, %c0_i32_0 : i32, i32
  }
  func.func @transform_5(%arg0: i32) -> (i32, i32) {
    %c0_i32 = arith.constant 0 : i32
    %c0_i32_0 = arith.constant 0 : i32
    %c0_i32_1 = arith.constant 0 : i32
    return %c0_i32, %c0_i32_0 : i32, i32
  }
  func.func @transform_6(%arg0: i32) -> (i32, i32) {
    %c0_i32 = arith.constant 0 : i32
    %c0_i32_0 = arith.constant 0 : i32
    %c0_i32_1 = arith.constant 0 : i32
    return %c0_i32, %c0_i32_0 : i32, i32
  }
  func.func @transform_7(%arg0: i32) -> (i32, i32) {
    %c0_i32 = arith.constant 0 : i32
    %c0_i32_0 = arith.constant 0 : i32
    %c0_i32_1 = arith.constant 0 : i32
    return %c0_i32, %c0_i32_0 : i32, i32
  }
  func.func @transform_8(%arg0: i32) -> (i32, i32) {
    %c0_i32 = arith.constant 0 : i32
    %c0_i32_0 = arith.constant 0 : i32
    return %arg0, %c0_i32 : i32, i32
  }
}

</mosaic_0001>

<bundles_post_ra>
// kernel: tpu_custom_call.1
= control target key start
LH: loop header
LB: loop body
LE: loop exit
PB: predicated region body
PF: predicated region fallthrough
CT: control target
= control target key end

     0   :  { %s1506_s0 = inlined_call_operand.vmem [shape: bf16[16,128], index: 0, kind: input, shape index: {}]   ;;  %s1507_s1 = inlined_call_operand.vmem [shape: bf16[16,128], index: 1, kind: input, shape index: {}]   ;;  %s1508_s2 = inlined_call_operand.vmem [shape: f32[4,128,64], index: 2, kind: input, shape index: {}]   ;;  %s1509_s3 = inlined_call_operand.vmem [shape: f32[1,64], index: 3, kind: input, shape index: {}]   ;;  %s1510_s4 = inlined_call_operand.vmem [shape: f32[64,64], index: 4, kind: input, shape index: {}]   ;;  %s1511_s5 = inlined_call_operand.vmem [shape: f32[1,64], index: 5, kind: input, shape index: {}]   ;;  %s1512_s6 = inlined_call_operand.vmem [shape: f32[1,64], index: 6, kind: input, shape index: {}]   ;;  %s1513_s7 = inlined_call_operand.<no memory space> [shape: f32[1,1], index: 7, kind: input, shape index: {}]   ;;  %s1514_s8 = inlined_call_operand.hbm [shape: f32[1,16], index: 8, kind: output, shape index: {}]  }
   0x1   :  { %v13_v0 = vstv %s1513_s7 }
   0x2   :  { %14 = vst [vmem:[#allocation2] sm:$0x1] %v13_v0 }
   0x3   :  { %v1239_v1 = vld [vmem:[%s1507_s1] sm:$0xff]   ;;  %v664_v3 = vld [vmem:[%s1508_s2 + $0x88] sm:$0xff]  ;;  %v665_v7 = vld [vmem:[%s1508_s2 + $0x90] sm:$0xff]  ;;  %s1180_s27 = smov 32   ;;  %s1181_s28 = smov 96  }
   0x4   :  { %v663_v2 = vld [vmem:[%s1508_s2 + $0x80] sm:$0xff]  ;;  %v724_v4 = vunpack.c.l.bf16 %v1239_v1  ;;  %v725_v5 = vunpack.c.h.bf16 %v1239_v1  ;;  %v666_v8 = vld [vmem:[%s1508_s2 + $0x98] sm:$0xff]  ;;  %v680_v11 = vld [vmem:[%s1508_s2 + $0x108] sm:$0xff]  ;;  %s1182_s14 = smov 64  }
   0x5   :  { %v977_v6 = vpack.c.bf16 %v664_v3, %v663_v2  ;;  %v679_v9 = vld [vmem:[%s1508_s2 + $0x100] sm:$0xff]  ;;  %v981_v10 = vpack.c.bf16 %v666_v8, %v665_v7  ;;  %v668_v13 = vld [vmem:[%s1508_s2 + $0xa8] sm:$0xff]  ;;  %v681_v16 = vld [vmem:[%s1508_s2 + $0x110] sm:$0xff] }
   0x6   :  { %v667_v12 = vld [vmem:[%s1508_s2 + $0xa0] sm:$0xff]  ;;  %v1139_v14 = vpack.i.bf16 %v725_v5, %v724_v4  ;;  %v1041_v15 = vpack.c.bf16 %v680_v11, %v679_v9  ;;  %v682_v17 = vld [vmem:[%s1508_s2 + $0x118] sm:$0xff]  ;;  %v684_v21 = vld [vmem:[%s1508_s2 + $0x128] sm:$0xff] }
   0x7   :  { %978 = vmatprep.subr.bf16.mxu1 %v977_v6  ;;  %v1045_v18 = vpack.c.bf16 %v682_v17, %v681_v16  ;;  %v985_v19 = vpack.c.bf16 %v668_v13, %v667_v12  ;;  %v683_v20 = vld [vmem:[%s1508_s2 + $0x120] sm:$0xff]  ;;  %v669_v22 = vld [vmem:[%s1508_s2 + $0xb0] sm:$0xff]  ;;  %v670_v23 = vld [vmem:[%s1508_s2 + $0xb8] sm:$0xff] }
   0x8   :  { %980 = vmatpush3.bf16.msra.mxu1 %v977_v6  ;;  %1140 = vrot.lane.b32.xlu0 %v1139_v14, %s1180_s27  ;;  %v1049_v24 = vpack.c.bf16 %v684_v21, %v683_v20  ;;  %v989_v25 = vpack.c.bf16 %v670_v23, %v669_v22  ;;  %v685_v26 = vld [vmem:[%s1508_s2 + $0x130] sm:$0xff]  ;;  %v686_v27 = vld [vmem:[%s1508_s2 + $0x138] sm:$0xff]  ;;  %v671_v28 = vld [vmem:[%s1508_s2 + $0xc0] sm:$0xff] }
   0x9   :  { %1150 = vrot.lane.b32.xlu1 %v1139_v14, %s1181_s28  ;;  %982 = vmatprep.subr.bf16.mxu1 %v981_v10  ;;  %v672_v29 = vld [vmem:[%s1508_s2 + $0xc8] sm:$0xff]  ;;  %v1053_v30 = vpack.c.bf16 %v686_v27, %v685_v26  ;;  %v687_v32 = vld [vmem:[%s1508_s2 + $0x140] sm:$0xff]  ;;  %v673_v34 = vld [vmem:[%s1508_s2 + $0xd0] sm:$0xff] }
   0xa   :  { %1042 = vmatprep.subr.bf16.mxu0 %v1041_v15  ;;  %v993_v31 = vpack.c.bf16 %v672_v29, %v671_v28  ;;  %v688_v33 = vld [vmem:[%s1508_s2 + $0x148] sm:$0xff]  ;;  %v674_v35 = vld [vmem:[%s1508_s2 + $0xd8] sm:$0xff]  ;;  %v689_v38 = vld [vmem:[%s1508_s2 + $0x150] sm:$0xff] }
   0xb   :  { %1044 = vmatpush3.bf16.msra.mxu0 %v1041_v15  ;;  %v1057_v36 = vpack.c.bf16 %v688_v33, %v687_v32  ;;  %v997_v37 = vpack.c.bf16 %v674_v35, %v673_v34  ;;  %v690_v39 = vld [vmem:[%s1508_s2 + $0x158] sm:$0xff]  ;;  %v675_v40 = vld [vmem:[%s1508_s2 + $0xe0] sm:$0xff]  ;;  %v676_v41 = vld [vmem:[%s1508_s2 + $0xe8] sm:$0xff] }
   0xc   :  { %984 = vmatpush3.bf16.msra.mxu1 %v981_v10  ;;  %1046 = vmatprep.subr.bf16.mxu0 %v1045_v18  ;;  %v1061_v42 = vpack.c.bf16 %v690_v39, %v689_v38 }
   0xd   :  { %1145 = vrot.lane.b32.xlu0 %v1139_v14, %s1182_s14  ;;  %986 = vmatprep.subr.bf16.mxu1 %v985_v19 }
   0xf   :  { %1048 = vmatpush3.bf16.msra.mxu0 %v1045_v18 }
  0x10   :  { %988 = vmatpush3.bf16.msra.mxu1 %v985_v19  ;;  %1050 = vmatprep.subr.bf16.mxu0 %v1049_v24 }
  0x11   :  { %990 = vmatprep.subr.bf16.mxu1 %v989_v25 }
  0x13   :  { %1052 = vmatpush3.bf16.msra.mxu0 %v1049_v24 }
  0x14   :  { %992 = vmatpush3.bf16.msra.mxu1 %v989_v25  ;;  %1054 = vmatprep.subr.bf16.mxu0 %v1053_v30 }
  0x15   :  { %994 = vmatprep.subr.bf16.mxu1 %v993_v31 }
  0x17   :  { %1056 = vmatpush3.bf16.msra.mxu0 %v1053_v30 }
  0x18   :  { %996 = vmatpush3.bf16.msra.mxu1 %v993_v31  ;;  %1058 = vmatprep.subr.bf16.mxu0 %v1057_v36 }
  0x19   :  { %15 = vsyncpa [#allocation4], 0  ;;  %998 = vmatprep.subr.bf16.mxu1 %v997_v37  ;;  %v1001_v43 = vpack.c.bf16 %v676_v41, %v675_v40  ;;  %v691_v44 = vld [vmem:[%s1508_s2 + $0x160] sm:$0xff]  ;;  %v692_v45 = vld [vmem:[%s1508_s2 + $0x168] sm:$0xff]  ;;  %vm241_vm1 = vcmask 523264   ;;  %vm1184_vm3 = vmmov 0  }
  0x1a   :  { %v677_v46 = vld [vmem:[%s1508_s2 + $0xf0] sm:$0xff]  ;;  %v678_v47 = vld [vmem:[%s1508_s2 + $0xf8] sm:$0xff]  ;;  %v1065_v48 = vpack.c.bf16 %v692_v45, %v691_v44  ;;  %v42_v52 = vld [vmem:[%s1508_s2] sm:$0xff]  ;;  %vm647_vm7 = vcmask 122880  }
  0x1b   :  { %1060 = vmatpush3.bf16.msra.mxu0 %v1057_v36  ;;  %v1005_v49 = vpack.c.bf16 %v678_v47, %v677_v46  ;;  %v693_v50 = vld [vmem:[%s1508_s2 + $0x170] sm:$0xff]  ;;  %v694_v51 = vld [vmem:[%s1508_s2 + $0x178] sm:$0xff]  ;;  %v43_v53 = vld [vmem:[%s1508_s2 + $0x8] sm:$0xff] }
  0x1c   :  { %1000 = vmatpush3.bf16.msra.mxu1 %v997_v37  ;;  %1062 = vmatprep.subr.bf16.mxu0 %v1061_v42  ;;  %v1069_v54 = vpack.c.bf16 %v694_v51, %v693_v50  ;;  %v1009_v55 = vpack.c.bf16 %v43_v53, %v42_v52  ;;  %v695_v56 = vld [vmem:[%s1508_s2 + $0x180] sm:$0xff]  ;;  %v696_v57 = vld [vmem:[%s1508_s2 + $0x188] sm:$0xff]  ;;  %v44_v2 = vld [vmem:[%s1508_s2 + $0x10] sm:$0xff] }
  0x1d   :  { %1002 = vmatprep.subr.bf16.mxu1 %v1001_v43  ;;  %v1073_v58 = vpack.c.bf16 %v696_v57, %v695_v56  ;;  %v719_v59 = vld [vmem:[%s1506_s0] sm:$0xff]   ;;  %v45_v3 = vld [vmem:[%s1508_s2 + $0x18] sm:$0xff]  ;;  %v47_v15 = vld [vmem:[%s1508_s2 + $0x28] sm:$0xff] }
  0x1e   :  { %v1358_v60 = vunpack.c.h.bf16 %v719_v59  ;;  %v720_v61 = vunpack.c.l.bf16 %v719_v59  ;;  %v1013_v11 = vpack.c.bf16 %v45_v3, %v44_v2  ;;  %v46_v12 = vld [vmem:[%s1508_s2 + $0x20] sm:$0xff]  ;;  %v697_v16 = vld [vmem:[%s1508_s2 + $0x190] sm:$0xff]  ;;  %v49_v23 = vld [vmem:[%s1508_s2 + $0x38] sm:$0xff] }
  0x1f   :  { %1064 = vmatpush3.bf16.msra.mxu0 %v1061_v42  ;;  %v1017_v20 = vpack.c.bf16 %v47_v15, %v46_v12  ;;  %v48_v22 = vld [vmem:[%s1508_s2 + $0x30] sm:$0xff]  ;;  %v699_v24 = vld [vmem:[%s1508_s2 + $0x1a0] sm:$0xff]  ;;  %v700_v25 = vld [vmem:[%s1508_s2 + $0x1a8] sm:$0xff] }
  0x20   :  { %1004 = vmatpush3.bf16.msra.mxu1 %v1001_v43  ;;  %1066 = vmatprep.subr.bf16.mxu0 %v1065_v48  ;;  %v40_v9 = vmul.f32 %v724_v4, %v720_v61  ;;  %v698_v4 = vld [vmem:[%s1508_s2 + $0x198] sm:$0xff]  ;;  %v1021_v27 = vpack.c.bf16 %v49_v23, %v48_v22  ;;  %v1081_v28 = vpack.c.bf16 %v700_v25, %v699_v24  ;;  %v50_v29 = vld [vmem:[%s1508_s2 + $0x40] sm:$0xff]  ;;  %v51_v30 = vld [vmem:[%s1508_s2 + $0x48] sm:$0xff]  ;;  %v1186_v23 = vmov 0  }
  0x21   :  { %1006 = vmatprep.subr.bf16.mxu1 %v1005_v49  ;;  %v1077_v21 = vpack.c.bf16 %v698_v4, %v697_v16  ;;  %v701_v31 = vld [vmem:[%s1508_s2 + $0x1b0] sm:$0xff]  ;;  %v702_v32 = vld [vmem:[%s1508_s2 + $0x1b8] sm:$0xff]  ;;  %v1025_v33 = vpack.c.bf16 %v51_v30, %v50_v29  ;;  %v703_v37 = vld [vmem:[%s1508_s2 + $0x1c0] sm:$0xff]  ;;  %v41_v59 = vmul.f32 %v725_v5, %v1358_v60  ;;  %1154 = vset.pattern.permute.xlu1 %v1186_v23 }
  0x22   :  { %v1085_v34 = vpack.c.bf16 %v702_v32, %v701_v31  ;;  %v52_v35 = vld [vmem:[%s1508_s2 + $0x50] sm:$0xff]  ;;  %v53_v36 = vld [vmem:[%s1508_s2 + $0x58] sm:$0xff]  ;;  %v704_v38 = vld [vmem:[%s1508_s2 + $0x1c8] sm:$0xff]  ;;  %1155 = vset.pattern.permute.xlu0 %v1186_v23 }
  0x23   :  { %1068 = vmatpush3.bf16.msra.mxu0 %v1065_v48  ;;  %v1029_v39 = vpack.c.bf16 %v53_v36, %v52_v35  ;;  %v1089_v40 = vpack.c.bf16 %v704_v38, %v703_v37  ;;  %v54_v41 = vld [vmem:[%s1508_s2 + $0x60] sm:$0xff]  ;;  %v55_v42 = vld [vmem:[%s1508_s2 + $0x68] sm:$0xff]  ;;  %v705_v43 = vld [vmem:[%s1508_s2 + $0x1d0] sm:$0xff]  ;;  %v564_v35 = vlaneseq }
  0x24   :  { %1008 = vmatpush3.bf16.msra.mxu1 %v1005_v49  ;;  %1070 = vmatprep.subr.bf16.mxu0 %v1069_v54  ;;  %v706_v44 = vld [vmem:[%s1508_s2 + $0x1d8] sm:$0xff]  ;;  %v1033_v45 = vpack.c.bf16 %v55_v42, %v54_v41  ;;  %v56_v47 = vld [vmem:[%s1508_s2 + $0x70] sm:$0xff]  ;;  %v707_v49 = vld [vmem:[%s1508_s2 + $0x1e0] sm:$0xff] }
  0x25   :  { %1010 = vmatprep.subr.bf16.mxu1 %v1009_v55  ;;  %v1093_v46 = vpack.c.bf16 %v706_v44, %v705_v43  ;;  %v57_v48 = vld [vmem:[%s1508_s2 + $0x78] sm:$0xff]  ;;  %v708_v50 = vld [vmem:[%s1508_s2 + $0x1e8] sm:$0xff]  ;;  %v709_v53 = vld [vmem:[%s1508_s2 + $0x1f0] sm:$0xff]  ;;  %v565_v36 = vshrl.u32 %v564_v35, 7 }
  0x26   :  { %v1037_v51 = vpack.c.bf16 %v57_v48, %v56_v47  ;;  %v1097_v52 = vpack.c.bf16 %v708_v50, %v707_v49  ;;  %v455_v56 = vld [vmem:[%s1510_s4] sm:$0xff]  ;;  %v456_v57 = vld [vmem:[%s1510_s4 + $0x8] sm:$0xff]  ;;  %v458_v1 = vld [vmem:[%s1510_s4 + $0x18] sm:$0xff] }
  0x27   :  { %1072 = vmatpush3.bf16.msra.mxu0 %v1069_v54  ;;  %v710_v54 = vld [vmem:[%s1508_s2 + $0x1f8] sm:$0xff]  ;;  %v461_v3 = vld [vmem:[%s1510_s4 + $0x30] sm:$0xff]  ;;  %v558_v22 = vld [vmem:[#allocation2] sm:$0x1]  ;;  %v566_v37 = vsub.s32 0, %v565_v36 }
  0x28   :  { %1074 = vmatprep.subr.bf16.mxu0 %v1073_v58  ;;  %561 = vperm.xlu1 %1154, %v558_v22   ;;  %v712_v24 = vld [vmem:[%s1511_s5] ss:$0 sm:$0xff]  ;;  %vm1123_vm6 = vmpackc.low %vm241_vm1, %vm241_vm1  ;;  %s1187_s5 = smov [#allocation3]  }
  0x29   :  { %s655_s13 = sshll.u32 %s1187_s5, 4  ;;  %s656_s13 = int_to_ptr.vmem [resolvable:$true] %s655_s13 }
  0x2a   :  { %s1156_s14 = scalar_lea.vmem %s656_s13, 16  ;;  %s1160_s1 = scalar_lea.vmem %s656_s13, 32 }
  0x2b   :  { %p1157_p0 = scmp.ne.s32.totalorder %s656_s13, %s1156_s14  ;;  %p1161_p1 = scmp.lt.s32.totalorder %s656_s13, %s656_s13 }
  0x2c   :  { %p1162_p2 = scmp.lt.s32.totalorder %s1160_s1, %s1156_s14 }
  0x2e   :  { %p1163_p3 = por %p1162_p2, %p1161_p1 }
  0x30   :  { %p1164_p4 = pnand %p1163_p3, %p1157_p0 }
  0x7a   :  { %v1141_v62 = vpop.permute.xlu0 %1140 }
  0x7b   :  { %v1143_v63 = vunpack.i.h.bf16 %v1141_v62  ;;  %v1142_v0 = vunpack.i.l.bf16 %v1141_v62  ;;  %v1366_v6 = vpop.permute.xlu1 %1150 }
  0x7c   :  { %v1152_v17 = vunpack.i.l.bf16 %v1366_v6 }
  0x7d   :  { %v67_v7 = vmul.f32 %v1143_v63, %v1358_v60  ;;  %v66_v8 = vmul.f32 %v1142_v0, %v720_v61  ;;  %v457_v63 = vld [vmem:[%s1510_s4 + $0x10] sm:$0xff]  ;;  %v460_v0 = vld [vmem:[%s1510_s4 + $0x28] sm:$0xff] }
  0x7e   :  { %v344_v26 = vmul.f32 %v1152_v17, %v720_v61  ;;  %v1109_v5 = vpack.c.bf16 %v458_v1, %v457_v63 }
  0x7f   :  { %v1146_v10 = vpop.permute.xlu0 %1145  ;;  %843 = vmatprep.mubr.f32.mxu1 %v66_v8 }
  0x80   :  { %v1148_v13 = vunpack.i.h.bf16 %v1146_v10  ;;  %v1147_v14 = vunpack.i.l.bf16 %v1146_v10  ;;  %844 = vmatmul.mubr.f32.vlgmr.msra.gmra.mrb[0].mxu1 %v67_v7 }
  0x81   :  { %1012 = vmatpush3.bf16.msra.mxu1 %v1009_v55  ;;  %878 = vmatprep.mubr.f32.mxu1 %v40_v9  ;;  %v1101_v55 = vpack.c.bf16 %v710_v54, %v709_v53 }
  0x82   :  { %v243_v18 = vmul.f32 %v1148_v13, %v1358_v60  ;;  %v242_v19 = vmul.f32 %v1147_v14, %v720_v61  ;;  %1014 = vmatprep.subr.bf16.mxu1 %v1013_v11  ;;  %v1105_v61 = vpack.c.bf16 %v456_v57, %v455_v56 }
  0x84   :  { %913 = vmatprep.mubr.f32.mxu0 %v242_v19 }
  0x85   :  { %914 = vmatmul.mubr.f32.vlgmr.msra.gmra.mrb[0].mxu0 %v243_v18  ;;  %1016 = vmatpush3.bf16.msra.mxu1 %v1013_v11  ;;  %v711_v11 = vld [vmem:[%s1509_s3] ss:$0 sm:$0xff] }
  0x86   :  { %1076 = vmatpush3.bf16.msra.mxu0 %v1073_v58  ;;  %1018 = vmatprep.subr.bf16.mxu1 %v1017_v20  ;;  %v1153_v58 = vunpack.i.h.bf16 %v1366_v6  ;;  %v462_v6 = vld [vmem:[%s1510_s4 + $0x38] sm:$0xff] }
  0x87   :  { %1078 = vmatprep.subr.bf16.mxu0 %v1077_v21  ;;  %948 = vmatprep.mubr.f32.mxu0 %v344_v26  ;;  %v1117_v7 = vpack.c.bf16 %v462_v6, %v461_v3 }
  0x88   :  { %v345_v62 = vmul.f32 %v1153_v58, %v1358_v60  ;;  %v459_v60 = vld [vmem:[%s1510_s4 + $0x20] sm:$0xff] }
  0x89   :  { %1020 = vmatpush3.bf16.msra.mxu1 %v1017_v20  ;;  %v1113_v2 = vpack.c.bf16 %v460_v0, %v459_v60  ;;  %v1183_v20 = vmov 0.0|0.0  }
  0x8a   :  { %1080 = vmatpush3.bf16.msra.mxu0 %v1077_v21  ;;  %1022 = vmatprep.subr.bf16.mxu1 %v1021_v27  ;;  %v1185_v21 = vmov 0.0  }
  0x8b   :  { %1082 = vmatprep.subr.bf16.mxu0 %v1081_v28 }
  0x8d   :  { %1024 = vmatpush3.bf16.msra.mxu1 %v1021_v27 }
  0x8e   :  { %1084 = vmatpush3.bf16.msra.mxu0 %v1081_v28  ;;  %1026 = vmatprep.subr.bf16.mxu1 %v1025_v33 }
  0x8f   :  { %1086 = vmatprep.subr.bf16.mxu0 %v1085_v34 }
  0x91   :  { %1028 = vmatpush3.bf16.msra.mxu1 %v1025_v33 }
  0x92   :  { %1088 = vmatpush3.bf16.msra.mxu0 %v1085_v34  ;;  %1030 = vmatprep.subr.bf16.mxu1 %v1029_v39  ;;  %v557_v34 = vld [vmem:[%s1512_s6] sm:$0x1] }
  0x93   :  { %1090 = vmatprep.subr.bf16.mxu0 %v1089_v40 }
  0x95   :  { %1032 = vmatpush3.bf16.msra.mxu1 %v1029_v39 }
  0x96   :  { %1092 = vmatpush3.bf16.msra.mxu0 %v1089_v40  ;;  %1034 = vmatprep.subr.bf16.mxu1 %v1033_v45 }
  0x97   :  { %1094 = vmatprep.subr.bf16.mxu0 %v1093_v46 }
  0x99   :  { %1036 = vmatpush3.bf16.msra.mxu1 %v1033_v45 }
  0x9a   :  { %1096 = vmatpush3.bf16.msra.mxu0 %v1093_v46  ;;  %1038 = vmatprep.subr.bf16.mxu1 %v1037_v51 }
  0x9b   :  { %1098 = vmatprep.subr.bf16.mxu0 %v1097_v52 }
  0x9d   :  { %1040 = vmatpush3.bf16.msra.mxu1 %v1037_v51 }
  0x9e   :  { %1100 = vmatpush3.bf16.msra.mxu0 %v1097_v52  ;;  %1121 = vmatprep.subr.bf16.mxu1 %v1183_v20 }
  0x9f   :  { %1102 = vmatprep.subr.bf16.mxu0 %v1101_v55 }
  0xa0   :  { %879 = vmatmul.mubr.f32.vlgmr.msra.gmra.mrb[0].mxu1 %v41_v59 }
  0xa1   :  { %974 = vmatprep.mubr.msk.f32.mxu1 %vm1184_vm3, %v1185_v21 }
  0xa2   :  { %1104 = vmatpush3.bf16.msra.mxu0 %v1101_v55 }
  0xa3   :  { %1106 = vmatprep.subr.bf16.mxu0 %v1105_v61 }
  0xa5   :  { %949 = vmatmul.mubr.f32.vlgmr.msra.gmra.mrb[0].mxu0 %v345_v62 }
  0xa6   :  { %1108 = vmatpush3.bf16.msra.mxu0 %v1105_v61 }
  0xa7   :  { %1110 = vmatprep.subr.bf16.mxu0 %v1109_v5  ;;  %v562_v38 = vpop.permute.xlu1 %561 }
  0xa8   :  { %v567_v39 = vrot.slane %v562_v38, %v566_v37 }
  0xaa   :  { %1112 = vmatpush3.bf16.msra.mxu0 %v1109_v5 }
  0xab   :  { %1114 = vmatprep.subr.bf16.mxu0 %v1113_v2 }
  0xae   :  { %1116 = vmatpush3.bf16.msra.mxu0 %v1113_v2 }
  0xaf   :  { %1118 = vmatprep.subr.bf16.mxu0 %v1117_v7 }
  0xb2   :  { %1120 = vmatpush3.bf16.msra.mxu0 %v1117_v7 }
 0x173   :  { %v880_v8 = vpop.f32.mrb[0].mxu1 }
 0x174   :  { %v226_v9 = vpop.f32.mrb[1].mxu1 }
 0x178   :  { %v950_v10 = vpop.f32.mrb[0].mxu0 }
 0x179   :  { %v1125_v12 = vadd.f32 %v950_v10, %v880_v8  ;;  %v429_v13 = vpop.f32.mrb[1].mxu0 }
 0x17a   :  { %v1126_v14 = vadd.f32 %v429_v13, %v226_v9 }
 0x17b   :  { %v448_v15 = vadd.f32 %v1125_v12, %v711_v11 }
 0x17c   :  { %v447_v16 = vadd.f32 %v1126_v14, %v711_v11 }
 0x17d   :  { %v452_v4 = vmul.f32 0.01, %v448_v15  ;;  %vm450_vm0 = vcmp.ge.f32.partialorder %v448_v15, 0.0 }
 0x17e   :  { %v451_v17 = vmul.f32 0.01, %v447_v16  ;;  %vm449_vm2 = vcmp.ge.f32.partialorder %v447_v16, 0.0 }
 0x17f   :  { %v454_v19 = vsel %vm450_vm0, %v448_v15, %v452_v4 }
 0x180   :  { %v453_v18 = vsel %vm449_vm2, %v447_v16, %v451_v17 }
 0x181   :  { %967 = vmatprep.mubr.msk.f32.mxu0 %vm241_vm1, %v453_v18 }
 0x182   :  { %968 = vmatmul.mubr.msk.f32.vlgmr.msra.gmra.mrb[2].mxu0 %vm241_vm1, %v454_v19 }
 0x255   :  { %v969_v25 = vpop.f32.mrb[2].mxu0 }
 0x256   :  { %v548_v26 = vadd.f32 %v969_v25, %v712_v24  ;;  %v542_v27 = vpop.f32.mrb[3].mxu0 }
 0x257   :  { %v543_v28 = vadd.f32 %v712_v24, %v542_v27 }
 0x258   :  { %vm552_vm4 = vcmp.ge.f32.partialorder %v548_v26, 0.0  ;;  %v554_v29 = vmul.f32 0.01, %v548_v26 }
 0x259   :  { %vm551_vm5 = vcmp.ge.f32.partialorder %v543_v28, 0.0  ;;  %v553_v30 = vmul.f32 0.01, %v543_v28 }
 0x25a   :  { %v556_v31 = vsel %vm552_vm4, %v548_v26, %v554_v29 }
 0x25b   :  { %v555_v32 = vsel %vm551_vm5, %v543_v28, %v553_v30 }
 0x25c   :  { %v1122_v33 = vpack.c.bf16 %v556_v31, %v555_v32 }
 0x25e   :  { %1124 = vmatpush3.bf16.xpose.msk.msra.mxu1 %vm1123_vm6, %v1122_v33 }
 0x265   :  { %975 = vmatmul.mubr.msk.f32.vlgmr.msra.gmra.mrb[2].mxu1 %vm241_vm1, %v557_v34 }
 0x338   :  { %v643_v40 = vpop.f32.mrb[2].mxu1 }
 0x339   :  { %v644_v41 = vadd.f32 %v643_v40, %v567_v39  ;;  %v976_v42 = vpop.f32.mrb[3].mxu1 }
 0x33b   :  { %648 = vst.msk [vmem:[#allocation3] sm:$0x1] %vm647_vm7, %v644_v41 }
 0x33c   :  { %1167 = shalt.err (!%p1164_p4)
}
 0x33d   :  { %s1168_s0 = scalar_lea.hbm %s1514_s8, 16 }
 0x33e   :  { %p1169_p5 = scmp.ne.s32.totalorder %s1514_s8, %s1168_s0  ;;  %p1172_p6 = scmp.lt.u32.totalorder %s1168_s0, %s1514_s8 }
 0x340   :  { %p1174_p7 = pnand %p1172_p6, %p1169_p5 }
 0x342   :  { %1177 = shalt.err (!%p1174_p7)
}
 0x343   :  { %658 = dma.vmem_to_hbm [thread:$0]  %s656_s13, 16, %s1514_s8, [#allocation4]  }
 0x344   :  { %1178 = dma.done.wait [#allocation4], 16  }
 0x345   :  { %1179 = vsyncadd [#allocation4], 4294967280 }
 0x346   :  { %662 = vsyncpa [#allocation4], 1 }

</bundles_post_ra>
